<compile_context>
chip_gen: v6e
topology: v6e:2x2x1
jax: 0.10.0
libtpu: 0.0.40
codegen_flags: <defaults>
</compile_context>

<pallas_src>
import functools
import math
import numpy as np
import jax
import jax.numpy as jnp
from jax import lax
from jax.experimental import pallas as pl
from jax.experimental.pallas import tpu as pltpu


# ------------------------------- tiling helper -------------------------------

def _tile_m(M, cap=256):
    """Largest row-tile <= cap that divides M and respects the (8, 128) rule."""
    if M <= cap:
        return M
    t = cap - (cap % 8)
    while t >= 8:
        if M % t == 0:
            return t
        t -= 8
    return M


# ----------------------------- Pallas kernels -----------------------------

def _linear_kernel(x_ref, w_ref, b_ref, o_ref, *, activation=None):
    # x: [TM, K], w: [K, N] (resident), b: [1, N]
    y = jnp.dot(x_ref[...], w_ref[...], preferred_element_type=jnp.float32)
    y = y + b_ref[...]
    if activation == "relu":
        y = jnp.maximum(y, 0.0)
    o_ref[...] = y.astype(o_ref.dtype)


def linear_tiled(x2d, w, b, activation=None, tm_cap=256):
    M, K = x2d.shape
    N = w.shape[1]
    TM = _tile_m(M, tm_cap)
    # TODO(synk): for large K (e.g. ffn_hidden >= 4096) add a K-reduction grid axis with a
    # VMEM f32 accumulator (pl.when init/finalize) so W and X tiles fit v7x's 64 MiB VMEM.
    return pl.pallas_call(
        functools.partial(_linear_kernel, activation=activation),
        out_shape=jax.ShapeDtypeStruct((M, N), jnp.float32),
        grid=(M // TM,),
        in_specs=[
            pl.BlockSpec((TM, K), lambda i: (i, 0)),
            pl.BlockSpec((K, N), lambda i: (0, 0)),   # resident weight
            pl.BlockSpec((1, N), lambda i: (0, 0)),
        ],
        out_specs=pl.BlockSpec((TM, N), lambda i: (i, 0)),
        compiler_params=pltpu.CompilerParams(dimension_semantics=("parallel",)),
    )(x2d, w, b.reshape(1, N))


def _attn_out_ln_kernel(qkv_ref, x_ref, mask_ref, wo_ref, bo_ref, g_ref, beta_ref,
                        o_ref, *, n_head):
    # One batch per grid step.  qkv: [S, 3D], x (residual): [S, D], mask: [1, S] int32.
    S, D3 = qkv_ref.shape
    D = D3 // 3
    dk = D // n_head
    scale = 1.0 / math.sqrt(dk)

    qkv = qkv_ref[...]
    q = qkv[:, :D] * jnp.float32(scale)        # fold 1/sqrt(dk) into q once
    k = qkv[:, D:2 * D]
    v = qkv[:, 2 * D:]
    masked = mask_ref[...] == 0                # [1, S], broadcast over query rows

    # concat(heads) @ Wo  ==  sum_h  head_h @ Wo[h*dk:(h+1)*dk, :]
    acc = jnp.zeros((S, D), jnp.float32)
    for h in range(n_head):                    # static unroll over heads
        sl = slice(h * dk, (h + 1) * dk)
        qh, kh, vh = q[:, sl], k[:, sl], v[:, sl]
        # q @ k^T via dot_general contracting the dk axis of both operands (no k.T relayout)
        s = lax.dot_general(qh, kh, (((1,), (1,)), ((), ())),
                            preferred_element_type=jnp.float32)          # [S, S]
        s = jnp.where(masked, jnp.float32(-10000.0), s)
        s = s - jnp.max(s, axis=-1, keepdims=True)
        p = jnp.exp(s)
        p = p * pl.reciprocal(jnp.sum(p, axis=-1, keepdims=True), approx=True)
        oh = jnp.dot(p, vh, preferred_element_type=jnp.float32)          # [S, dk]
        acc = acc + jnp.dot(oh, wo_ref[sl, :], preferred_element_type=jnp.float32)

    y = acc + bo_ref[...]
    # residual add + LayerNorm (eps = 1e-12, biased variance)
    z = y + x_ref[...]
    mean = jnp.mean(z, axis=-1, keepdims=True)
    var = jnp.mean((z - mean) ** 2, axis=-1, keepdims=True)
    zn = (z - mean) * lax.rsqrt(var + 1e-12)
    o_ref[...] = (g_ref[...] * zn + beta_ref[...]).astype(o_ref.dtype)


def attention_out_layernorm(qkv2d, x2d, mask_b1s, wo, bo, gamma, beta, n_head, seq_len):
    M, D3 = qkv2d.shape
    D = D3 // 3
    S = seq_len
    B = M // S
    return pl.pallas_call(
        functools.partial(_attn_out_ln_kernel, n_head=n_head),
        out_shape=jax.ShapeDtypeStruct((M, D), jnp.float32),
        grid=(B,),
        in_specs=[
            pl.BlockSpec((S, D3), lambda b: (b, 0)),          # qkv rows of batch b
            pl.BlockSpec((S, D), lambda b: (b, 0)),           # residual rows of batch b
            pl.BlockSpec((None, 1, S), lambda b: (b, 0, 0)),  # int32 key mask [1, S]
            pl.BlockSpec((D, D), lambda b: (0, 0)),           # Wo resident
            pl.BlockSpec((1, D), lambda b: (0, 0)),
            pl.BlockSpec((1, D), lambda b: (0, 0)),
            pl.BlockSpec((1, D), lambda b: (0, 0)),
        ],
        out_specs=pl.BlockSpec((S, D), lambda b: (b, 0)),     # lane-dense [S, D] store
        compiler_params=pltpu.CompilerParams(dimension_semantics=("parallel",)),
    )(qkv2d, x2d, mask_b1s, wo, bo.reshape(1, D),
      gamma.reshape(1, D), beta.reshape(1, D))


def _ffn_ln_kernel(x_ref, w1_ref, b1_ref, w2_ref, b2_ref, g_ref, beta_ref, o_ref):
    # Fused FFN (linear -> relu -> linear) + residual + LayerNorm on one [TM, D] tile.
    x = x_ref[...]
    h = jnp.dot(x, w1_ref[...], preferred_element_type=jnp.float32) + b1_ref[...]
    h = jnp.maximum(h, 0.0)                                   # intermediate stays on-chip
    y = jnp.dot(h, w2_ref[...], preferred_element_type=jnp.float32) + b2_ref[...]
    z = y + x
    mean = jnp.mean(z, axis=-1, keepdims=True)
    var = jnp.mean((z - mean) ** 2, axis=-1, keepdims=True)
    zn = (z - mean) * lax.rsqrt(var + 1e-12)
    o_ref[...] = (g_ref[...] * zn + beta_ref[...]).astype(o_ref.dtype)


def ffn_add_layernorm(x2d, w1, b1, w2, b2, gamma, beta, tm_cap=256):
    M, D = x2d.shape
    F = w1.shape[1]
    TM = _tile_m(M, tm_cap)
    return pl.pallas_call(
        _ffn_ln_kernel,
        out_shape=jax.ShapeDtypeStruct((M, D), jnp.float32),
        grid=(M // TM,),
        in_specs=[
            pl.BlockSpec((TM, D), lambda i: (i, 0)),
            pl.BlockSpec((D, F), lambda i: (0, 0)),
            pl.BlockSpec((1, F), lambda i: (0, 0)),
            pl.BlockSpec((F, D), lambda i: (0, 0)),
            pl.BlockSpec((1, D), lambda i: (0, 0)),
            pl.BlockSpec((1, D), lambda i: (0, 0)),
            pl.BlockSpec((1, D), lambda i: (0, 0)),
        ],
        out_specs=pl.BlockSpec((TM, D), lambda i: (i, 0)),
        compiler_params=pltpu.CompilerParams(dimension_semantics=("parallel",)),
    )(x2d, w1, b1.reshape(1, F), w2, b2.reshape(1, D),
      gamma.reshape(1, D), beta.reshape(1, D))


# --------------------------- Encoder forward pass ---------------------------

def encoder_layer_forward(p, x2d, mask_b1s, n_head, seq_len):
    # (1) fused QKV projection
    qkv = linear_tiled(x2d, p["w_qkv"], p["b_qkv"])
    # (2) multi-head attention + output projection + dropout1(identity) + add & norm
    x2d = attention_out_layernorm(qkv, x2d, mask_b1s, p["wo"], p["bo"],
                                  p["ln1_g"], p["ln1_b"], n_head, seq_len)
    # (3) FFN + dropout2(identity) + add & norm
    x2d = ffn_add_layernorm(x2d, p["w_ff1"], p["b_ff1"], p["w_ff2"], p["b_ff2"],
                            p["ln2_g"], p["ln2_b"])
    return x2d


def encoder_forward(params, tokens, mask_b1s):
    B, S = tokens.shape
    d_model = params["tok_emb"].shape[1]
    # TransformerEmbedding: token embedding gather + sinusoidal PE (dropout = identity)
    x = params["tok_emb"][tokens] + params["pos_enc"][:S][None, :, :]
    x2d = x.reshape(B * S, d_model)
    for layer_p in params["layers"]:
        x2d = encoder_layer_forward(layer_p, x2d, mask_b1s, params["n_head"], S)
    return x2d.reshape(B, S, d_model)


# ----------------------------- Parameter setup -----------------------------

def sinusoidal_encoding(max_len, d_model):
    pos = np.arange(max_len, dtype=np.float32)[:, None]
    i2 = np.arange(0, d_model, 2, dtype=np.float32)
    div = np.power(10000.0, i2 / d_model)
    pe = np.zeros((max_len, d_model), dtype=np.float32)
    pe[:, 0::2] = np.sin(pos / div)
    pe[:, 1::2] = np.cos(pos / div)
    return jnp.asarray(pe)


def init_params(key, enc_voc_size, max_len, d_model, ffn_hidden, n_head, n_layers):
    def dense(k, fan_in, fan_out):
        return 0.02 * jax.random.normal(k, (fan_in, fan_out), jnp.float32)

    keys = jax.random.split(key, 1 + n_layers)
    tok_emb = 0.02 * jax.random.normal(keys[0], (enc_voc_size, d_model), jnp.float32)
    tok_emb = tok_emb.at[1].set(0.0)  # padding_idx = 1 as in TokenEmbedding

    layers = []
    for l in range(n_layers):
        ks = jax.random.split(keys[1 + l], 6)
        wq = dense(ks[0], d_model, d_model)
        wk = dense(ks[1], d_model, d_model)
        wv = dense(ks[2], d_model, d_model)
        layers.append(dict(
            # Q/K/V projections fused into a single [D, 3D] matmul
            w_qkv=jnp.concatenate([wq, wk, wv], axis=1),
            b_qkv=jnp.zeros((3 * d_model,), jnp.float32),
            wo=dense(ks[3], d_model, d_model), bo=jnp.zeros((d_model,), jnp.float32),
            ln1_g=jnp.ones((d_model,), jnp.float32), ln1_b=jnp.zeros((d_model,), jnp.float32),
            w_ff1=dense(ks[4], d_model, ffn_hidden), b_ff1=jnp.zeros((ffn_hidden,), jnp.float32),
            w_ff2=dense(ks[5], ffn_hidden, d_model), b_ff2=jnp.zeros((d_model,), jnp.float32),
            ln2_g=jnp.ones((d_model,), jnp.float32), ln2_b=jnp.zeros((d_model,), jnp.float32),
        ))
    return dict(tok_emb=tok_emb, pos_enc=sinusoidal_encoding(max_len, d_model),
                layers=layers, n_head=n_head)


# ---------------------------------- Main -----------------------------------

if __name__ == "__main__":
    # Small config consistent with the module's constructor arguments.
    enc_voc_size, max_len = 50, 16
    d_model, ffn_hidden, n_head, n_layers = 32, 64, 4, 2
    B, S = 2, 8

    key = jax.random.PRNGKey(0)
    k_par, k_tok = jax.random.split(key)
    params = init_params(k_par, enc_voc_size, max_len, d_model, ffn_hidden,
                         n_head, n_layers)

    tokens = jax.random.randint(k_tok, (B, S), 0, enc_voc_size, dtype=jnp.int32)
    tokens = tokens.at[0, -2:].set(1)  # some padding (pad idx = 1)

    # src key mask: key positions != pad, kept integer, shape [B, 1, S]
    # (broadcast over heads / query positions happens inside the attention kernel)
    mask_b1s = (tokens != 1).astype(jnp.int32)[:, None, :]

    out = encoder_forward(params, tokens, mask_b1s)
    jax.block_until_ready(out)
    assert out.shape == (B, S, d_model)
    # TODO(synk): dropout layers are treated as identity (inference mode); matmul operands
    # kept in f32 to preserve the PyTorch module's numerics (bf16 cast is a further option
    # on v6e/v7x).
    print("KERNEL_OK")
</pallas_src>

<mosaic_0001>
module attributes {stable_mosaic.version = 11 : i64} {
  func.func @_linear_kernel(%arg0: i32, %arg1: memref<16x32xf32, #tpu.memory_space<vmem>>, %arg2: memref<32x96xf32, #tpu.memory_space<vmem>>, %arg3: memref<1x96xf32, #tpu.memory_space<vmem>>, %arg4: memref<16x96xf32, #tpu.memory_space<vmem>>) attributes {dimension_semantics = [#tpu.dimension_semantics<parallel>], iteration_bounds = array<i64: 1>, scalar_prefetch = 0 : i64, scratch_operands = 0 : i64, tpu.core_type = #tpu.core_type<tc>, window_params = [{transform_indices = @transform_0, window_bounds = array<i64: 16, 32>}, {pipeline_mode = #tpu.pipeline_mode<synchronous>, transform_indices = @transform_1, window_bounds = array<i64: 32, 96>}, {pipeline_mode = #tpu.pipeline_mode<synchronous>, transform_indices = @transform_2, window_bounds = array<i64: 1, 96>}, {transform_indices = @transform_3, window_bounds = array<i64: 16, 96>}]} {
    %c0 = arith.constant 0 : index
    %c0_0 = arith.constant 0 : index
    %0 = vector.load %arg1[%c0, %c0_0] : memref<16x32xf32, #tpu.memory_space<vmem>>, vector<16x32xf32>
    %c0_1 = arith.constant 0 : index
    %c0_2 = arith.constant 0 : index
    %1 = vector.load %arg2[%c0_1, %c0_2] : memref<32x96xf32, #tpu.memory_space<vmem>>, vector<32x96xf32>
    %cst = arith.constant dense<0.000000e+00> : vector<16x96xf32>
    %2 = tpu.matmul %0, %1, %cst {dimension_numbers = #tpu.dot_dimension_numbers<[1], [0], [0], [1], [0, 0, 1, 1], [], []>} : vector<16x32xf32>, vector<32x96xf32>, vector<16x96xf32> -> vector<16x96xf32>
    %c0_3 = arith.constant 0 : index
    %c0_4 = arith.constant 0 : index
    %3 = vector.load %arg3[%c0_3, %c0_4] : memref<1x96xf32, #tpu.memory_space<vmem>>, vector<1x96xf32>
    %4 = vector.broadcast %3 : vector<1x96xf32> to vector<16x96xf32>
    %5 = arith.addf %2, %4 : vector<16x96xf32>
    %c0_5 = arith.constant 0 : index
    %c0_6 = arith.constant 0 : index
    %6 = vector.load %arg4[%c0_5, %c0_6] : memref<16x96xf32, #tpu.memory_space<vmem>>, vector<16x96xf32>
    tpu.vector_store %arg4[%c0_5, %c0_6], %5 {strides = array<i32>} : memref<16x96xf32, #tpu.memory_space<vmem>>, vector<16x96xf32>,
    return
  }
  func.func @transform_0(%arg0: i32) -> (i32, i32) {
    %c0_i32 = arith.constant 0 : i32
    %c0_i32_0 = arith.constant 0 : i32
    return %arg0, %c0_i32 : i32, i32
  }
  func.func @transform_1(%arg0: i32) -> (i32, i32) {
    %c0_i32 = arith.constant 0 : i32
    %c0_i32_0 = arith.constant 0 : i32
    %c0_i32_1 = arith.constant 0 : i32
    return %c0_i32, %c0_i32_0 : i32, i32
  }
  func.func @transform_2(%arg0: i32) -> (i32, i32) {
    %c0_i32 = arith.constant 0 : i32
    %c0_i32_0 = arith.constant 0 : i32
    %c0_i32_1 = arith.constant 0 : i32
    return %c0_i32, %c0_i32_0 : i32, i32
  }
  func.func @transform_3(%arg0: i32) -> (i32, i32) {
    %c0_i32 = arith.constant 0 : i32
    %c0_i32_0 = arith.constant 0 : i32
    return %arg0, %c0_i32 : i32, i32
  }
}

</mosaic_0001>

<bundles_post_ra>
// kernel: tpu_custom_call.1
= control target key start
LH: loop header
LB: loop body
LE: loop exit
PB: predicated region body
PF: predicated region fallthrough
CT: control target
= control target key end

     0   :  { %8 = vsyncpa [#allocation3], 0  ;;  %s298_s0 = inlined_call_operand.hbm [shape: f32[16,32], index: 0, kind: input, shape index: {}]   ;;  %s299_s1 = inlined_call_operand.hbm [shape: f32[32,96], index: 1, kind: input, shape index: {}]   ;;  %s300_s2 = inlined_call_operand.vmem [shape: f32[1,96], index: 2, kind: input, shape index: {}]   ;;  %s301_s3 = inlined_call_operand.hbm [shape: f32[16,96], index: 3, kind: output, shape index: {}]  }
   0x1   :  { %9 = vsyncpa [#allocation6], 0 }
   0x2   :  { %10 = vsyncpa [#allocation4], 0  ;;  %s250_s12 = smov [#allocation2]  }
   0x3   :  { %s16_s13 = sshll.u32 %s250_s12, 4  ;;  %s17_s13 = int_to_ptr.vmem [resolvable:$true] %s16_s13 }
   0x4   :  { %s192_s14 = scalar_lea.vmem %s17_s13, 256  ;;  %p197_p1 = scmp.lt.s32.totalorder %s17_s13, %s17_s13 }
   0x5   :  { %p193_p0 = scmp.ne.s32.totalorder %s17_s13, %s192_s14  ;;  %p198_p2 = scmp.lt.s32.totalorder %s192_s14, %s192_s14 }
   0x7   :  { %p199_p3 = por %p198_p2, %p197_p1 }
   0x9   :  { %p200_p4 = pnand %p199_p3, %p193_p0 }
   0xb   :  { %203 = shalt.err (!%p200_p4)
}
   0xc   :  { %s251_s15 = smov 128   ;;  %s252_s16 = smov 8  }
   0xd   :  { %22 = dma.hbm_to_vmem [thread:$0]  %s298_s0, 256, %s17_s13, [#allocation3], %s251_s15, %s251_s15, %s252_s16  }
   0xe   :  { %s253_s19 = smov [#allocation5]  }
   0xf   :  { %s28_s20 = sshll.u32 %s253_s19, 4  ;;  %s29_s20 = int_to_ptr.vmem [resolvable:$true] %s28_s20 }
  0x10   :  { %s212_s21 = scalar_lea.vmem %s29_s20, 512  ;;  %p217_p6 = scmp.lt.s32.totalorder %s29_s20, %s29_s20 }
  0x11   :  { %p213_p5 = scmp.ne.s32.totalorder %s29_s20, %s212_s21  ;;  %p218_p7 = scmp.lt.s32.totalorder %s212_s21, %s212_s21 }
  0x13   :  { %p219_p8 = por %p218_p7, %p217_p6 }
  0x15   :  { %p220_p9 = pnand %p219_p8, %p213_p5 }
  0x17   :  { %223 = shalt.err (!%p220_p9)
}
  0x18   :  { %34 = dma.hbm_to_vmem [thread:$0]  %s299_s1, 512, %s29_s20, [#allocation6], %s251_s15, %s251_s15, %s252_s16  }
  0x19   :  { %244 = dma.done.wait [#allocation3], 256  }
  0x1a   :  { %245 = vsyncadd [#allocation3], 4294967040 }
  0x1b   :  { %246 = dma.done.wait [#allocation6], 512  }
  0x1c   :  { %247 = vsyncadd [#allocation6], 4294966784  ;;  %vm56_vm0 = vcmask 261120   ;;  %v48_v0 = vld [vmem:[#allocation5 + $0x18] sm:$0xff]  ;;  %v47_v1 = vld [vmem:[#allocation5 + $0x10] sm:$0xff]  ;;  %vm138_vm1 = vcmask 785408  }
  0x1d   :  { %168 = vmatprep.subr.mxu0 %v48_v0  ;;  %v43_v2 = vld [vmem:[#allocation2] sm:$0xff]  ;;  %v46_v3 = vld [vmem:[#allocation5 + $0x8] sm:$0xff]  ;;  %v45_v4 = vld [vmem:[#allocation5] sm:$0xff]  ;;  %s254_s24 = smov [#allocation7]  }
  0x1e   :  { %169 = vmatpush3.msra.mxu0 %v48_v0  ;;  %176 = vmatprep.mubr.msk.f32.mxu0 %vm56_vm0, %v43_v2  ;;  %v44_v5 = vld [vmem:[#allocation2 + $0x8] sm:$0xff]  ;;  %v159_v6 = vld [vmem:[%s300_s2] ss:$0 sm:$0xff]  ;;  %s146_s25 = sshll.u32 %s254_s24, 4  ;;  %s147_s25 = int_to_ptr.vmem [resolvable:$true] %s146_s25 }
  0x1f   :  { %170 = vmatprep.subr.mxu0 %v47_v1  ;;  %s224_s26 = scalar_lea.vmem %s147_s25, 256  ;;  %p229_p11 = scmp.lt.s32.totalorder %s147_s25, %s147_s25 }
  0x20   :  { %171 = vmatpush3.msra.mxu0 %v47_v1  ;;  %p225_p10 = scmp.ne.s32.totalorder %s147_s25, %s224_s26  ;;  %p230_p12 = scmp.lt.s32.totalorder %s224_s26, %s224_s26 }
  0x21   :  { %172 = vmatprep.subr.mxu0 %v46_v3 }
  0x22   :  { %173 = vmatpush3.msra.mxu0 %v46_v3  ;;  %p231_p13 = por %p230_p12, %p229_p11 }
  0x23   :  { %174 = vmatprep.subr.mxu0 %v45_v4 }
  0x24   :  { %175 = vmatpush3.msra.mxu0 %v45_v4  ;;  %p232_p0 = pnand %p231_p13, %p225_p10 }
  0x25   :  { %177 = vmatmul.mubr.msk.f32.vlgmr.msra.gmra.mxu0 %vm56_vm0, %v44_v5 }
  0xe5   :  { %v178_v7 = vpop.f32.mrf.mxu0 }
  0xe6   :  { %v135_v8 = vadd.f32 %v178_v7, %v159_v6 }
  0xe7   :  { %v129_v9 = vpop.f32.mrf.mxu0 }
  0xe8   :  { %v130_v10 = vadd.f32 %v159_v6, %v129_v9  ;;  %140 = vst.msk [vmem:[#allocation7 + $0x8] sm:$0xff] %vm138_vm1, %v135_v8 }
  0xea   :  { %139 = vst.msk [vmem:[#allocation7] sm:$0xff] %vm138_vm1, %v130_v10 }
  0xeb   :  { %235 = shalt.err (!%p232_p0)
}
  0xec   :  { %152 = dma.vmem_to_hbm [thread:$0]  %s147_s25, 256, %s301_s3, [#allocation4], %s251_s15, %s251_s15, %s252_s16  }
  0xed   :  { %248 = dma.done.wait [#allocation4], 256  }
  0xee   :  { %249 = vsyncadd [#allocation4], 4294967040 }
  0xef   :  { %156 = vsyncpa [#allocation3], 1 }
  0xf0   :  { %157 = vsyncpa [#allocation6], 1 }
  0xf1   :  { %158 = vsyncpa [#allocation4], 1 }

</bundles_post_ra>
